<compile_context>
chip_gen: v7x
topology: tpu7x:2x2x1
jax: 0.10.0
libtpu: 0.0.40
codegen_flags: <defaults>
</compile_context>

<pallas_src>
import functools

import jax
import jax.numpy as jnp
from jax.experimental import pallas as pl
from jax.experimental.pallas import tpu as pltpu

_LANE = 128      # lane-padding target for feature (output) dims
_SUBLANE = 8     # sublane granularity for the batch tile
_K_TILE = 16     # contraction-dim padding (bf16 sublane packing of the weights)


def _round_up(x, m):
    return ((x + m - 1) // m) * m


def _cdiv(a, b):
    return (a + b - 1) // b


@functools.lru_cache(maxsize=1)
def _vmem_limit_bytes():
    """~75% of this generation's physical VMEM (48 MiB v7x, 96 MiB v5e/v6e)."""
    try:
        cap = int(pltpu.get_tpu_info().vmem_capacity_bytes)
    except Exception:
        cap = 64 * 1024 * 1024  # conservative fallback
    return max(16 * 1024 * 1024, int(0.75 * cap))


def _activation_fn(name):
    if name == "tanh":
        return jnp.tanh
    if name == "sigmoid":
        return jax.nn.sigmoid
    if name == "leaky_relu":
        return lambda x: jnp.where(x > 0, x, 0.01 * x)   # nn.LeakyReLU default
    return lambda x: jnp.maximum(x, 0.0)                  # relu (default)


def _make_mlp_kernel(num_layers, mxu_dtype, activation):
    """Kernel refs: (x, w0, b0, w1, b1, ..., w_{L-1}, b_{L-1}, out)."""
    act = _activation_fn(activation)

    def kernel(*refs):
        x_ref = refs[0]
        out_ref = refs[-1]
        wb = refs[1:-1]
        assert len(wb) == 2 * num_layers

        x = x_ref[...]                                    # [bt, K_pad], mxu_dtype
        for li in range(num_layers):
            w = wb[2 * li][...]                           # [in_pad, out_pad]
            b = wb[2 * li + 1][...]                       # [1, out_pad], f32
            acc = jnp.dot(x, w, preferred_element_type=jnp.float32) + b
            if li < num_layers - 1:
                x = act(acc).astype(mxu_dtype)            # activation in f32
            else:
                out_ref[...] = acc.astype(out_ref.dtype)  # no act on last layer

    return kernel


def init_encoder_params(key, stride_len, n_u, n_y, n_neurons, n_layer, state_size):
    """Deterministic synthetic init. Returns list of (W[in,out], b[out])."""
    input_dim = stride_len * n_u + stride_len * n_y
    dims = [input_dim] + [n_neurons] * n_layer + [state_size]
    params = []
    for i in range(len(dims) - 1):
        key, kw, kb = jax.random.split(key, 3)
        scale = 1.0 / jnp.sqrt(jnp.float32(dims[i]))
        w = jax.random.uniform(kw, (dims[i], dims[i + 1]), jnp.float32,
                               minval=-scale, maxval=scale)
        b = jax.random.uniform(kb, (dims[i + 1],), jnp.float32,
                               minval=-scale, maxval=scale)
        params.append((w, b))
    return params


@functools.partial(
    jax.jit,
    static_argnames=("batch_tile", "mxu_dtype", "out_dtype",
                     "weight_buffer_count", "activation"),
)
def encoder_forward(inputs_y, inputs_u, params, batch_tile=512,
                    mxu_dtype=jnp.bfloat16, out_dtype=jnp.float32,
                    weight_buffer_count=1, activation="relu"):
    """Pallas forward.

    batch_tile: main tuning knob. 512 suits v6e (128 MiB VMEM); on v5e 128
    matches the 4x128x128 MXU; on v7x the grid is kept >= 2 so both
    TensorCores are used and the tile is auto-shrunk if VMEM is tight.
    mxu_dtype=f32 is bit-closer to the PyTorch f32 reference but ~3x slower
    on the MXU (debug only); bf16 operands + f32 accumulation is the default.
    """
    B, y_dim = inputs_y.shape
    u_dim = inputs_u.shape[1]
    num_layers = len(params)
    state_size = params[-1][0].shape[1]

    # ---- feature padding --------------------------------------------------
    in_dim = y_dim + u_dim
    k_pad = _round_up(in_dim, _K_TILE)                     # layer-0 contraction dim
    out_dims = [w.shape[1] for (w, _) in params]
    out_pads = [_round_up(d, _LANE) for d in out_dims]     # lane-dense outputs
    in_pads = [k_pad] + out_pads[:-1]

    # concat + K-pad + cast in ONE fused XLA elementwise pass: the kernel gets
    # a single, already-mxu_dtype, 16-aligned input block (one MXU push for
    # layer 0, no in-kernel concat / cast, half the streamed bytes for bf16).
    x = jnp.concatenate([inputs_y.astype(jnp.float32),
                         inputs_u.astype(jnp.float32)], axis=-1)
    x = jnp.pad(x, ((0, 0), (0, k_pad - in_dim))).astype(mxu_dtype)
    # NOTE: the batch dim is intentionally NOT padded. The last grid block is
    # ragged: OOB rows read garbage, but rows are independent in a matmul, the
    # store is masked to in-bounds rows, and we never look at rows >= B.

    def pad_w(w, rows, cols):
        return jnp.pad(w, ((0, rows - w.shape[0]),
                           (0, cols - w.shape[1]))).astype(mxu_dtype)

    def pad_b(b, cols):
        return jnp.pad(b.reshape(1, -1).astype(jnp.float32),
                       ((0, 0), (0, cols - b.shape[0])))

    flat_wb = []
    for li, (w, b) in enumerate(params):
        flat_wb.append(pad_w(w, in_pads[li], out_pads[li]))
        flat_wb.append(pad_b(b, out_pads[li]))

    # ---- batch tile -------------------------------------------------------
    vmem_limit = _vmem_limit_bytes()

    # Keep the grid length >= 2 (v7x has 2 TensorCores sharded by "parallel")
    # while honoring the requested batch_tile cap.
    n_tiles = max(2, 2 * _cdiv(B, 2 * max(int(batch_tile), 1)))
    bt = _round_up(_cdiv(B, n_tiles), _SUBLANE)
    bt = max(_SUBLANE, min(bt, _round_up(int(batch_tile), _SUBLANE)))

    # Shrink bt if the resident weights + streamed blocks would blow the VMEM
    # budget (matters for large n_neurons, especially on v7x's 64 MiB VMEM).
    wb_buffers = weight_buffer_count if weight_buffer_count is not None else 2
    resident = sum(a.size * a.dtype.itemsize for a in flat_wb) * wb_buffers
    max_pad = max(out_pads + [k_pad])
    mxu_bytes = jnp.dtype(mxu_dtype).itemsize
    out_bytes = jnp.dtype(out_dtype).itemsize

    def vmem_estimate(bt_):
        stream = 2 * bt_ * k_pad * mxu_bytes + 2 * bt_ * out_pads[-1] * out_bytes
        live = 3 * bt_ * max_pad * 4   # f32 accumulator / activation temporaries
        return resident + stream + live

    # TODO(synk): for very large n_neurons (weights that cannot stay resident
    # in VMEM) add an N/K tiling grid axis or stream the hidden-layer weights
    # from HBM with memory_space=pl.ANY + pltpu.emit_pipeline; here we only
    # shrink the batch tile, which covers moderately large hidden sizes.
    while bt > _SUBLANE and vmem_estimate(bt) > int(0.8 * vmem_limit):
        bt = max(_SUBLANE, _round_up(bt // 2, _SUBLANE))

    grid = (_cdiv(B, bt),)

    # ---- block specs ------------------------------------------------------
    def const_spec(shape):
        if weight_buffer_count is None:
            return pl.BlockSpec(shape, lambda i: (0, 0))
        # Invariant index_map => never re-fetched after step 0; single-buffer
        # by default to halve the weights' VMEM footprint at zero cost.
        return pl.BlockSpec(shape, lambda i: (0, 0),
                            pipeline_mode=pl.Buffered(weight_buffer_count))

    kernel = _make_mlp_kernel(num_layers, mxu_dtype, activation)

    out = pl.pallas_call(
        kernel,
        out_shape=jax.ShapeDtypeStruct((B, out_pads[-1]), out_dtype),
        grid=grid,
        in_specs=[pl.BlockSpec((bt, k_pad), lambda i: (i, 0))]
                 + [const_spec(a.shape) for a in flat_wb],
        out_specs=pl.BlockSpec((bt, out_pads[-1]), lambda i: (i, 0)),
        compiler_params=pltpu.CompilerParams(
            dimension_semantics=("parallel",),
            vmem_limit_bytes=vmem_limit,
        ),
    )(x, *flat_wb)

    # Strip lane padding (batch was never padded).
    return out[:, :state_size]


def encoder_forward_ref(inputs_y, inputs_u, params, activation="relu"):
    """Pure-JAX f32 reference mirroring the PyTorch forward."""
    act = _activation_fn(activation)
    x = jnp.concatenate([inputs_y.astype(jnp.float32),
                         inputs_u.astype(jnp.float32)], axis=-1)
    for i, (w, b) in enumerate(params):
        x = x @ w + b
        if i < len(params) - 1:
            x = act(x)
    return x


if __name__ == "__main__":
    # Small config consistent with the module's constructor.
    stride_len = 4
    n_u = 3
    n_y = 5
    n_neurons = 32
    n_layer = 2          # -> 3 Linear layers total (in->h, h->h, h->state)
    state_size = 16
    batch = 20           # not a tile multiple -> exercises the ragged last block

    key = jax.random.PRNGKey(0)
    k_params, k_y, k_u = jax.random.split(key, 3)

    params = init_encoder_params(
        k_params, stride_len, n_u, n_y, n_neurons, n_layer, state_size
    )
    inputs_y = jax.random.normal(k_y, (batch, stride_len * n_y), jnp.float32)
    inputs_u = jax.random.normal(k_u, (batch, stride_len * n_u), jnp.float32)

    ref = encoder_forward_ref(inputs_y, inputs_u, params)

    # Default fast path: bf16 MXU operands / f32 accumulation, grid >= 2,
    # single-buffered weights. (bf16 operands are an intentional, documented
    # precision tradeoff vs. the f32 PyTorch reference.)
    out = jax.block_until_ready(encoder_forward(inputs_y, inputs_u, params))
    assert out.shape == (batch, state_size)
    assert jnp.allclose(out, ref, atol=3e-2, rtol=3e-2)

    # f32 MXU path with a small tile (longer grid, ragged edge): exact semantics.
    out32 = jax.block_until_ready(
        encoder_forward(inputs_y, inputs_u, params,
                        batch_tile=8, mxu_dtype=jnp.float32)
    )
    assert out32.shape == (batch, state_size)
    assert jnp.allclose(out32, ref, atol=2e-3, rtol=2e-3)

    # Fallback path with default double-buffered weight blocks.
    out_db = jax.block_until_ready(
        encoder_forward(inputs_y, inputs_u, params, weight_buffer_count=None)
    )
    assert jnp.allclose(out_db, ref, atol=3e-2, rtol=3e-2)

    print("KERNEL_OK")
</pallas_src>

<mosaic_0001>
module attributes {stable_mosaic.version = 11 : i64} {
  func.func @kernel(%arg0: i32, %arg1: memref<16x32xbf16, #tpu.memory_space<vmem>>, %arg2: memref<32x128xbf16, #tpu.memory_space<vmem>>, %arg3: memref<1x128xf32, #tpu.memory_space<vmem>>, %arg4: memref<128x128xbf16, #tpu.memory_space<vmem>>, %arg5: memref<1x128xf32, #tpu.memory_space<vmem>>, %arg6: memref<128x128xbf16, #tpu.memory_space<vmem>>, %arg7: memref<1x128xf32, #tpu.memory_space<vmem>>, %arg8: memref<16x128xf32, #tpu.memory_space<vmem>>) attributes {dimension_semantics = [#tpu.dimension_semantics<parallel>], iteration_bounds = array<i64: 2>, scalar_prefetch = 0 : i64, scratch_operands = 0 : i64, tpu.core_type = #tpu.core_type<tc>, window_params = [{transform_indices = @transform_0, window_bounds = array<i64: 16, 32>}, {pipeline_mode = #tpu.pipeline_mode<synchronous>, transform_indices = @transform_1, window_bounds = array<i64: 32, 128>}, {pipeline_mode = #tpu.pipeline_mode<synchronous>, transform_indices = @transform_2, window_bounds = array<i64: 1, 128>}, {pipeline_mode = #tpu.pipeline_mode<synchronous>, transform_indices = @transform_3, window_bounds = array<i64: 128, 128>}, {pipeline_mode = #tpu.pipeline_mode<synchronous>, transform_indices = @transform_4, window_bounds = array<i64: 1, 128>}, {pipeline_mode = #tpu.pipeline_mode<synchronous>, transform_indices = @transform_5, window_bounds = array<i64: 128, 128>}, {pipeline_mode = #tpu.pipeline_mode<synchronous>, transform_indices = @transform_6, window_bounds = array<i64: 1, 128>}, {transform_indices = @transform_7, window_bounds = array<i64: 16, 128>}]} {
    %c0 = arith.constant 0 : index
    %c0_0 = arith.constant 0 : index
    %0 = vector.load %arg1[%c0, %c0_0] : memref<16x32xbf16, #tpu.memory_space<vmem>>, vector<16x32xbf16>
    %c0_1 = arith.constant 0 : index
    %c0_2 = arith.constant 0 : index
    %1 = vector.load %arg2[%c0_1, %c0_2] : memref<32x128xbf16, #tpu.memory_space<vmem>>, vector<32x128xbf16>
    %c0_3 = arith.constant 0 : index
    %c0_4 = arith.constant 0 : index
    %2 = vector.load %arg3[%c0_3, %c0_4] : memref<1x128xf32, #tpu.memory_space<vmem>>, vector<1x128xf32>
    %cst = arith.constant dense<0.000000e+00> : vector<16x128xf32>
    %3 = tpu.matmul %0, %1, %cst {dimension_numbers = #tpu.dot_dimension_numbers<[1], [0], [0], [1], [0, 0, 1, 1], [], []>} : vector<16x32xbf16>, vector<32x128xbf16>, vector<16x128xf32> -> vector<16x128xf32>
    %4 = vector.broadcast %2 : vector<1x128xf32> to vector<16x128xf32>
    %5 = arith.addf %3, %4 : vector<16x128xf32>
    %cst_5 = arith.constant 0.000000e+00 : f32
    %6 = vector.broadcast %cst_5 : f32 to vector<16x128xf32>
    %7 = arith.maximumf %5, %6 : vector<16x128xf32>
    %8 = arith.truncf %7 : vector<16x128xf32> to vector<16x128xbf16>
    %c0_6 = arith.constant 0 : index
    %c0_7 = arith.constant 0 : index
    %9 = vector.load %arg4[%c0_6, %c0_7] : memref<128x128xbf16, #tpu.memory_space<vmem>>, vector<128x128xbf16>
    %c0_8 = arith.constant 0 : index
    %c0_9 = arith.constant 0 : index
    %10 = vector.load %arg5[%c0_8, %c0_9] : memref<1x128xf32, #tpu.memory_space<vmem>>, vector<1x128xf32>
    %cst_10 = arith.constant dense<0.000000e+00> : vector<16x128xf32>
    %11 = tpu.matmul %8, %9, %cst_10 {dimension_numbers = #tpu.dot_dimension_numbers<[1], [0], [0], [1], [0, 0, 1, 1], [], []>} : vector<16x128xbf16>, vector<128x128xbf16>, vector<16x128xf32> -> vector<16x128xf32>
    %12 = vector.broadcast %10 : vector<1x128xf32> to vector<16x128xf32>
    %13 = arith.addf %11, %12 : vector<16x128xf32>
    %cst_11 = arith.constant 0.000000e+00 : f32
    %14 = vector.broadcast %cst_11 : f32 to vector<16x128xf32>
    %15 = arith.maximumf %13, %14 : vector<16x128xf32>
    %16 = arith.truncf %15 : vector<16x128xf32> to vector<16x128xbf16>
    %c0_12 = arith.constant 0 : index
    %c0_13 = arith.constant 0 : index
    %17 = vector.load %arg6[%c0_12, %c0_13] : memref<128x128xbf16, #tpu.memory_space<vmem>>, vector<128x128xbf16>
    %c0_14 = arith.constant 0 : index
    %c0_15 = arith.constant 0 : index
    %18 = vector.load %arg7[%c0_14, %c0_15] : memref<1x128xf32, #tpu.memory_space<vmem>>, vector<1x128xf32>
    %cst_16 = arith.constant dense<0.000000e+00> : vector<16x128xf32>
    %19 = tpu.matmul %16, %17, %cst_16 {dimension_numbers = #tpu.dot_dimension_numbers<[1], [0], [0], [1], [0, 0, 1, 1], [], []>} : vector<16x128xbf16>, vector<128x128xbf16>, vector<16x128xf32> -> vector<16x128xf32>
    %20 = vector.broadcast %18 : vector<1x128xf32> to vector<16x128xf32>
    %21 = arith.addf %19, %20 : vector<16x128xf32>
    %c0_17 = arith.constant 0 : index
    %c0_18 = arith.constant 0 : index
    %22 = vector.load %arg8[%c0_17, %c0_18] : memref<16x128xf32, #tpu.memory_space<vmem>>, vector<16x128xf32>
    tpu.vector_store %arg8[%c0_17, %c0_18], %21 {strides = array<i32>} : memref<16x128xf32, #tpu.memory_space<vmem>>, vector<16x128xf32>,
    return
  }
  func.func @transform_0(%arg0: i32) -> (i32, i32) {
    %c0_i32 = arith.constant 0 : i32
    %c0_i32_0 = arith.constant 0 : i32
    return %arg0, %c0_i32 : i32, i32
  }
  func.func @transform_1(%arg0: i32) -> (i32, i32) {
    %c0_i32 = arith.constant 0 : i32
    %c0_i32_0 = arith.constant 0 : i32
    %c0_i32_1 = arith.constant 0 : i32
    return %c0_i32, %c0_i32_0 : i32, i32
  }
  func.func @transform_2(%arg0: i32) -> (i32, i32) {
    %c0_i32 = arith.constant 0 : i32
    %c0_i32_0 = arith.constant 0 : i32
    %c0_i32_1 = arith.constant 0 : i32
    return %c0_i32, %c0_i32_0 : i32, i32
  }
  func.func @transform_3(%arg0: i32) -> (i32, i32) {
    %c0_i32 = arith.constant 0 : i32
    %c0_i32_0 = arith.constant 0 : i32
    %c0_i32_1 = arith.constant 0 : i32
    return %c0_i32, %c0_i32_0 : i32, i32
  }
  func.func @transform_4(%arg0: i32) -> (i32, i32) {
    %c0_i32 = arith.constant 0 : i32
    %c0_i32_0 = arith.constant 0 : i32
    %c0_i32_1 = arith.constant 0 : i32
    return %c0_i32, %c0_i32_0 : i32, i32
  }
  func.func @transform_5(%arg0: i32) -> (i32, i32) {
    %c0_i32 = arith.constant 0 : i32
    %c0_i32_0 = arith.constant 0 : i32
    %c0_i32_1 = arith.constant 0 : i32
    return %c0_i32, %c0_i32_0 : i32, i32
  }
  func.func @transform_6(%arg0: i32) -> (i32, i32) {
    %c0_i32 = arith.constant 0 : i32
    %c0_i32_0 = arith.constant 0 : i32
    %c0_i32_1 = arith.constant 0 : i32
    return %c0_i32, %c0_i32_0 : i32, i32
  }
  func.func @transform_7(%arg0: i32) -> (i32, i32) {
    %c0_i32 = arith.constant 0 : i32
    %c0_i32_0 = arith.constant 0 : i32
    return %arg0, %c0_i32 : i32, i32
  }
}

</mosaic_0001>

<bundles_post_ra>
// kernel: encoder_forward.1
= control target key start
LH: loop header
LB: loop body
LE: loop exit
PB: predicated region body
PF: predicated region fallthrough
CT: control target
= control target key end

     0   :  { %s1185_s24 = smov 0   ;;  %s1187_s25 = smov 0   ;;  %s1355_s0 = inlined_call_operand.vmem [shape: bf16[20,32], index: 0, kind: input, shape index: {}]   ;;  %s1356_s1 = inlined_call_operand.vmem [shape: bf16[32,128], index: 1, kind: input, shape index: {}]   ;;  %s1357_s2 = inlined_call_operand.vmem [shape: f32[1,128], index: 2, kind: input, shape index: {}]   ;;  %s1358_s3 = inlined_call_operand.vmem [shape: bf16[128,128], index: 3, kind: input, shape index: {}]   ;;  %s1359_s4 = inlined_call_operand.vmem [shape: f32[1,128], index: 4, kind: input, shape index: {}]   ;;  %s1360_s5 = inlined_call_operand.vmem [shape: bf16[128,128], index: 5, kind: input, shape index: {}]   ;;  %s1361_s6 = inlined_call_operand.vmem [shape: f32[1,128], index: 6, kind: input, shape index: {}]   ;;  %s1362_s7 = inlined_call_operand.vmem [shape: f32[20,128], index: 7, kind: output, shape index: {}]  }
   0x1   :  { %s1189_s26 = smov 0  }
   0x2 LB: > { %s1198_s27 = sadd.s32 4294967295, %s1109_s26   ;;  %s1200_s28 = sadd.s32 1, %s1109_s26   ;;  %s1109_s26 = sphi %s1189_s26, %s1366_s26   ;;  %s1105_s25 = sphi %s1187_s25, %s1365_s25   ;;  %s1101_s24 = sphi %s1185_s24, %s1364_s24  }
   0x3   : > { %s173_s29 = ssub.s32 %s1109_s26, %s1200_s28  ;;  %s176_s30 = sadd.s32 1, %s1105_s25 }
   0x4   : > { %p174_p0 = scmp.eq.s32.totalorder %s173_s29, 0  ;;  %p186_p1 = scmp.ne.s32.totalorder %s1105_s25, %s1101_s24 }
   0x5   : > { %p187_p2 = scmp.eq.s32.totalorder %s1198_s27, 1  ;;  %p830_p3 = scmp.ge.s32.totalorder %s1109_s26, 1 }
   0x6   : > { %s1208_s8 = scalar_select %p174_p0, %s1105_s25, %s176_s30  }
   0x7   : > { %p1210_p4 = por %p187_p2, %p186_p1  ;;  %p246_p5 = scmp.lt.s32.totalorder %s1109_s26, 3 }
   0x9   : > { %p247_p6 = pnand %p830_p3, %p246_p5 }
   0xa   : > { %v1036_v0 = vld [vmem:[%s1356_s1] sm:$0xff] (!%p247_p6)   ;;  %v1143_v1 = vmov (!%p247_p6), 0.0   ;;  %v1037_v2 = vld [vmem:[%s1356_s1 + $0x8] sm:$0xff] (!%p247_p6)   ;;  %vm1144_vm0 = vmmov (!%p247_p6), 0   ;;  %s1225_s14 = sshll.u32 (!%p247_p6), %s1198_s27, 1  ;;  %vm331_vm1 = vcmask (!%p247_p6), 261120  }
   0xb   : > { %250 = sbr.rel (%p247_p6) target bundleno = 729 (0x2d9), region = 48  ;;  %898 = vmatprep.subr.bf16.mxu0 (!%p247_p6), %v1143_v1  ;;  %906 = vmatprep.subr.bf16.mxu1 (!%p247_p6), %v1143_v1  ;;  %p286_p7 = scmp.lt.s32.totalorder (!%p247_p6), %s1225_s14, 2  ;;  %v1039_v3 = vld [vmem:[%s1358_s3] sm:$0xff] (!%p247_p6)   ;;  %v1040_v4 = vld [vmem:[%s1358_s3 + $0x8] sm:$0xff] (!%p247_p6)   ;;  %v1041_v5 = vld [vmem:[%s1358_s3 + $0x10] sm:$0xff] (!%p247_p6)  }
   0xc   : > { %899 = vmatpush3.bf16.msra.mxu0 (!%p247_p6), %v1036_v0  ;;  %902 = vmatprep.mubr.msk.bf16.mxu0 (!%p247_p6), %vm1144_vm0, %v1143_v1  ;;  %v1042_v7 = vld [vmem:[%s1358_s3 + $0x18] sm:$0xff] (!%p247_p6)   ;;  %v1043_v8 = vld [vmem:[%s1358_s3 + $0x20] sm:$0xff] (!%p247_p6)   ;;  %v1044_v9 = vld [vmem:[%s1358_s3 + $0x28] sm:$0xff] (!%p247_p6)   ;;  %s278_s26 = sand.u32 (!%p247_p6), 1, %s1101_s24  }
   0xd   : > { %900 = vmatprep.subr.bf16.mxu0 (!%p247_p6), %v1143_v1  ;;  %922 = vmatprep.mubr.msk.bf16.mxu1 (!%p247_p6), %vm1144_vm0, %v1143_v1  ;;  %v1045_v10 = vld [vmem:[%s1358_s3 + $0x30] sm:$0xff] (!%p247_p6)   ;;  %v1046_v11 = vld [vmem:[%s1358_s3 + $0x38] sm:$0xff] (!%p247_p6)   ;;  %v1047_v12 = vld [vmem:[%s1360_s5] sm:$0xff] (!%p247_p6)   ;;  %s831_s29 = sshll.u32 (!%p247_p6), %s278_s26, 4 }
   0xe   : > { %907 = vmatpush3.bf16.msra.mxu1 (!%p247_p6), %v1039_v3  ;;  %v1048_v13 = vld [vmem:[%s1360_s5 + $0x8] sm:$0xff] (!%p247_p6)   ;;  %v1049_v14 = vld [vmem:[%s1360_s5 + $0x10] sm:$0xff] (!%p247_p6)   ;;  %v1050_v15 = vld [vmem:[%s1360_s5 + $0x18] sm:$0xff] (!%p247_p6)   ;;  %s1310_s11 = scalar_lea.vmem (!%p247_p6), [#allocation2], %s831_s29  }
   0xf   : > { %908 = vmatprep.subr.bf16.mxu1 (!%p247_p6), %v1143_v1  ;;  %v1051_v16 = vld [vmem:[%s1360_s5 + $0x20] sm:$0xff] (!%p247_p6)   ;;  %v1052_v17 = vld [vmem:[%s1360_s5 + $0x28] sm:$0xff] (!%p247_p6)   ;;  %v1053_v28 = vld [vmem:[%s1360_s5 + $0x30] sm:$0xff] (!%p247_p6)  }
  0x10   : > { %901 = vmatpush3.bf16.msra.mxu0 (!%p247_p6), %v1037_v2  ;;  %v834_v18 = vld [vmem:[%s1357_s2] ss:$0 sm:$0xff] (!%p247_p6)  ;;  %v1054_v29 = vld [vmem:[%s1360_s5 + $0x38] sm:$0xff] (!%p247_p6)  }
  0x11   : > { %926 = vmatprep.subr.bf16.mxu0 (!%p247_p6), %v1143_v1  ;;  %v839_v30 = vld [vmem:[%s1359_s4] ss:$0 sm:$0xff] (!%p247_p6) }
  0x12   : > { %s287_s17 = scalar_select %p286_p7, %s1225_s14, 2  ;;  %909 = vmatpush3.bf16.msra.mxu1 %v1040_v4  ;;  %v848_v40 = vld [vmem:[%s1361_s6] ss:$0 sm:$0xff] }
  0x13   : > { %910 = vmatprep.subr.bf16.mxu1 %v1143_v1  ;;  %s616_s24 = ssub.s32 (%p1210_p4), 3, %s1225_s14  ;;  %s874_s12 = sshll.u32 (%p1210_p4), %s1198_s27, 4 }
  0x14   : > { %s833_s20 = sshll.u32 %s287_s17, 2  ;;  %p617_p8 = scmp.lt.s32.totalorder (%p1210_p4), %s616_s24, 2 }
  0x15   : > { %s289_s23 = scalar_lea.vmem %s1355_s0, %s833_s20  ;;  %s1321_s16 = scalar_lea.vmem (%p1210_p4), %s1362_s7, %s874_s12  }
  0x16   : > { %v1038_v6 = vld [vmem:[%s289_s23] sm:$0xff]   ;;  %911 = vmatpush3.bf16.msra.mxu1 %v1041_v5 }
  0x17   : > { %903 = vmatmul.mubr.msk.bf16.vlgmr.msra.gmra.mrb[0].mxu0 %vm331_vm1, %v1038_v6  ;;  %912 = vmatprep.subr.bf16.mxu1 %v1143_v1 }
  0x18   : > { %942 = vmatprep.mubr.msk.bf16.mxu0 %vm1144_vm0, %v1143_v1  ;;  %927 = vmatpush3.bf16.msra.mxu0 %v1047_v12 }
  0x19   : > { %928 = vmatprep.subr.bf16.mxu0 %v1143_v1 }
  0x1a   : > { %913 = vmatpush3.bf16.msra.mxu1 %v1042_v7 }
  0x1b   : > { %914 = vmatprep.subr.bf16.mxu1 %v1143_v1 }
  0x1c   : > { %929 = vmatpush3.bf16.msra.mxu0 %v1048_v13 }
  0x1d   : > { %930 = vmatprep.subr.bf16.mxu0 %v1143_v1 }
  0x1e   : > { %915 = vmatpush3.bf16.msra.mxu1 %v1043_v8 }
  0x1f   : > { %916 = vmatprep.subr.bf16.mxu1 %v1143_v1 }
  0x20   : > { %931 = vmatpush3.bf16.msra.mxu0 %v1049_v14 }
  0x21   : > { %932 = vmatprep.subr.bf16.mxu0 %v1143_v1 }
  0x22   : > { %917 = vmatpush3.bf16.msra.mxu1 %v1044_v9 }
  0x23   : > { %918 = vmatprep.subr.bf16.mxu1 %v1143_v1 }
  0x24   : > { %933 = vmatpush3.bf16.msra.mxu0 %v1050_v15 }
  0x25   : > { %934 = vmatprep.subr.bf16.mxu0 %v1143_v1 }
  0x26   : > { %919 = vmatpush3.bf16.msra.mxu1 %v1045_v10 }
  0x27   : > { %920 = vmatprep.subr.bf16.mxu1 %v1143_v1 }
  0x28   : > { %935 = vmatpush3.bf16.msra.mxu0 %v1051_v16 }
  0x29   : > { %936 = vmatprep.subr.bf16.mxu0 %v1143_v1 }
  0x2a   : > { %921 = vmatpush3.bf16.msra.mxu1 %v1046_v11 }
  0x2c   : > { %937 = vmatpush3.bf16.msra.mxu0 %v1052_v17 }
  0x2d   : > { %938 = vmatprep.subr.bf16.mxu0 %v1143_v1 }
  0x30   : > { %939 = vmatpush3.bf16.msra.mxu0 %v1053_v28 }
  0x31   : > { %940 = vmatprep.subr.bf16.mxu0 %v1143_v1 }
  0x34   : > { %941 = vmatpush3.bf16.msra.mxu0 %v1054_v29 }
  0xea   : > { %v369_v19 = vpop.f32.mrb[0].mxu0 }
  0xeb   : > { %v370_v20 = vadd.f32 %v834_v18, %v369_v19  ;;  %v904_v21 = vpop.f32.mrb[1].mxu0 }
  0xec   : > { %v372_v22 = vpop.f32.mrb[2].mxu0 }
  0xed   : > { %v373_v23 = vadd.f32 %v834_v18, %v372_v22  ;;  %v905_v24 = vpop.f32.mrb[3].mxu0  ;;  %v376_v25 = vmax.f32 %v370_v20, 0.0 }
  0xef   : > { %v377_v26 = vmax.f32 %v373_v23, 0.0 }
  0xf1   : > { %v378_v27 = vpack.c.bf16 %v377_v26, %v376_v25 }
  0xf3   : > { %923 = vmatmul.mubr.bf16.vlgmr.msra.gmra.mrb[0].mxu1 %v378_v27 }
 0x1c6   : > { %v484_v31 = vpop.f32.mrb[0].mxu1 }
 0x1c7   : > { %v485_v32 = vadd.f32 %v839_v30, %v484_v31  ;;  %v924_v33 = vpop.f32.mrb[1].mxu1 }
 0x1c8   : > { %v487_v34 = vpop.f32.mrb[2].mxu1 }
 0x1c9   : > { %v488_v35 = vadd.f32 %v839_v30, %v487_v34  ;;  %v925_v36 = vpop.f32.mrb[3].mxu1  ;;  %v491_v37 = vmax.f32 %v485_v32, 0.0 }
 0x1cb   : > { %v492_v38 = vmax.f32 %v488_v35, 0.0 }
 0x1cd   : > { %v493_v39 = vpack.c.bf16 %v492_v38, %v491_v37 }
 0x1cf   : > { %943 = vmatmul.mubr.bf16.vlgmr.msra.gmra.mrb[4].mxu0 %v493_v39 }
 0x2a1   : > { %614 = sbr.rel (!%p1210_p4) target bundleno = 729 (0x2d9), region = 52 }
 0x2a2   : > { %v599_v41 = vpop.f32.mrb[4].mxu0 }
 0x2a3   : > { %v600_v42 = vadd.f32 %v848_v40, %v599_v41  ;;  %v944_v43 = vpop.f32.mrb[5].mxu0 }
 0x2a4   : > { %v602_v44 = vpop.f32.mrb[6].mxu0 }
 0x2a5   : > { %606 = vst [vmem:[%s1310_s11] sm:$0xff] %v600_v42  ;;  %v603_v45 = vadd.f32 %v848_v40, %v602_v44  ;;  %v945_v46 = vpop.f32.mrb[7].mxu0 }
 0x2a7   : > { %607 = vst [vmem:[%s1310_s11 + $0x8] sm:$0xff] %v603_v45 }
 0x2a8   : > { %s1368_s24 = smov (!%p617_p8, %s616_s24), 2 }
 0x2a9   : > { %s859_s17 = sshll.u32 %s1368_s24, 7 }
 0x2aa   : > { %p862_p9 = scmp.eq.s32.totalorder %s859_s17, 0 }
 0x2ab   : > { %s1327_s18 = sshrl.u32 (!%p862_p9), %s1368_s24, 1 }
 0x2ac   : > { %625 = sbr.rel (%p862_p9) target bundleno = 729 (0x2d9), region = 56  ;;  %p863_p10 = scmp.le.s32.totalorder (!%p862_p9), %s1327_s18, 0 }
 0x2b3   : > { %783 = sbr.rel (%p863_p10) target bundleno = 708 (0x2c4), region = 132  ;;  %s1111_s27 = smov (!%p863_p10), %s1321_s16  }
 0x2b4   : > { %s1115_s9 = smov (!%p863_p10), %s1310_s11   ;;  %s1119_s14 = smov (!%p863_p10), 0  }
 0x2b5   : > { %s1123_s19 = smov (!%p863_p10), 0  }
 0x2ba LB: >> { %v689_v47 = vld [vmem:[%s1117_s9] sm:$0xff]  ;;  %v691_v48 = vld [vmem:[%s1117_s9 + $0x8] sm:$0xff]  ;;  %s693_s20 = sadd.s32 1, %s1121_s14  ;;  %s683_s19 = sadd.s32 1, %s1125_s19   ;;  %s1125_s19 = sphi %s1123_s19, %s683_s19   ;;  %s1121_s14 = sphi %s1119_s14, %s1120_s14   ;;  %s1117_s9 = sphi %s1115_s9, %s698_s9   ;;  %s1113_s27 = sphi %s1111_s27, %s699_s27  }
 0x2bb   : >> { %690 = vst [vmem:[%s1113_s27] sm:$0xff] %v689_v47  ;;  %692 = vst [vmem:[%s1113_s27 + $0x8] sm:$0xff] %v691_v48  ;;  %p694_p11 = scmp.ge.s32.totalorder %s693_s20, %s1327_s18  ;;  %p682_p12 = scmp.ge.s32.totalorder %s683_s19, %s1327_s18 }
 0x2bd   : >> { %s1370_s20 = smov (%p694_p11, %s693_s20), 0  ;;  %685 = sbr.rel (!%p682_p12) target bundleno = 698 (0x2ba), region = 138 }
 0x2be   : >> { %s864_s21 = sshll.u32 %s1370_s20, 4  ;;  %s1120_s14 = smov %s1370_s20  }
 0x2bf   : >> { %s698_s9 = scalar_lea.vmem %s1310_s11, %s864_s21 [#allocation2]   ;;  %s699_s27 = scalar_lea.vmem %s1321_s16, %s864_s21  }
 0x2c4 PF: > { %s1337_s22 = sand.u32 1, %s1368_s24   ;;  %s875_s23 = sshll.u32 %s1327_s18, 4 }
 0x2c5   : > { %s704_s26 = scalar_lea.vmem %s1310_s11, %s875_s23 [#allocation2]   ;;  %s706_s29 = scalar_lea.vmem %s1321_s16, %s875_s23  }
 0x2c6   : > { %p869_p13 = scmp.le.s32.totalorder %s1337_s22, 0 }
 0x2c7   : > { %s1127_s30 = smov (!%p869_p13), %s706_s29   ;;  %s1131_s10 = smov (!%p869_p13), %s704_s26  }
 0x2c8   : > { %797 = sbr.rel (%p869_p13) target bundleno = 729 (0x2d9), region = 143  ;;  %s1135_s12 = smov (!%p869_p13), 0  }
 0x2c9   : > { %s1139_s13 = smov (!%p869_p13), 0  }
 0x2cf LB: >> { %v716_v49 = vld [vmem:[%s1133_s10] sm:$0xff]  ;;  %s718_s24 = sadd.s32 1, %s1137_s12  ;;  %s710_s13 = sadd.s32 1, %s1141_s13   ;;  %s1141_s13 = sphi %s1139_s13, %s710_s13   ;;  %s1137_s12 = sphi %s1135_s12, %s1136_s12   ;;  %s1133_s10 = sphi %s1131_s10, %s723_s10   ;;  %s1129_s30 = sphi %s1127_s30, %s724_s30  }
 0x2d0   : >> { %717 = vst [vmem:[%s1129_s30] sm:$0xff] %v716_v49  ;;  %p719_p0 = scmp.ge.s32.totalorder %s718_s24, %s1337_s22  ;;  %p709_p1 = scmp.ge.s32.totalorder %s710_s13, %s1337_s22 }
 0x2d2   : >> { %s1372_s24 = smov (%p719_p0, %s718_s24), 0  ;;  %712 = sbr.rel (!%p709_p1) target bundleno = 719 (0x2cf), region = 149 }
 0x2d3   : >> { %s870_s11 = sshll.u32 %s1372_s24, 3  ;;  %s1136_s12 = smov %s1372_s24  }
 0x2d4   : >> { %s723_s10 = scalar_lea.vmem %s704_s26, %s870_s11 [#allocation2]   ;;  %s724_s30 = scalar_lea.vmem %s706_s29, %s870_s11  }
 0x2d9 PF: > { %p14_p2 = scmp.ge.s32.totalorder %s1200_s28, 4   ;;  %s1364_s24 = smov %s1105_s25 }
 0x2da   : > { %s1365_s25 = smov %s1208_s8  ;;  %s1366_s26 = smov %s1200_s28 }
 0x2db   :  { %16 = sbr.rel (!%p14_p2) target bundleno = 2 (0x2), region = 160 }

</bundles_post_ra>
